<compile_context>
chip_gen: v7x
topology: tpu7x:2x2x1
jax: 0.10.0
libtpu: 0.0.40
codegen_flags: <defaults>
</compile_context>

<pallas_src>
import jax
import jax.numpy as jnp
from jax.experimental import pallas as pl
from jax.experimental.pallas import tpu as pltpu


# ----------------------------------------------------------------------------
# Kernel
# ----------------------------------------------------------------------------
def basic_block_resize_kernel(x_ref, t1_ref, b1_ref, t2_ref, b2_ref, o_ref):
    """Fused block for NB lane-packed image groups.

    x_ref  : (NB, H, L_in)       input row slabs (L_in = P*W*Cin, lane-dense)
    t1_ref : (3, L_in, L_out)    conv1 banded weights (BN1 scale folded), per kh
    b1_ref : (1, L_out)          bn1 folded bias, tiled per pixel
    t2_ref : (3, L_out, L_in)    conv2 banded weights (BN2 scale folded)
    b2_ref : (1, L_in)           bn2 folded bias
    o_ref  : (NB, H, L_in)       output row slabs
    """
    NB, H, L_in = x_ref.shape
    M = NB * H
    mm_dtype = t1_ref.dtype          # matmul operand dtype (f32 or bf16)

    x = x_ref[...].astype(jnp.float32).reshape(M, L_in)

    # Per-image row index, built once and reused for all four shifts
    # (JAX does not CSE broadcast_in_dim inside the traced body).
    y = jax.lax.broadcasted_iota(jnp.int32, (NB, H, 1), 1).reshape(M, 1)
    is_top = y == 0
    is_bot = y == H - 1

    def shift_up(a):
        # result[r] = a[r-1]; zeroed at the first row of each image.
        return jnp.where(is_top, 0.0, pltpu.roll(a, shift=1, axis=0))

    def shift_down(a):
        # result[r] = a[r+1]; zeroed at the last row of each image.
        return jnp.where(is_bot, 0.0, pltpu.roll(a, shift=M - 1, axis=0))

    def conv3x3(a, t_ref):
        s = jnp.dot(shift_up(a).astype(mm_dtype), t_ref[0],
                    preferred_element_type=jnp.float32)
        s = s + jnp.dot(a.astype(mm_dtype), t_ref[1],
                        preferred_element_type=jnp.float32)
        s = s + jnp.dot(shift_down(a).astype(mm_dtype), t_ref[2],
                        preferred_element_type=jnp.float32)
        return s

    # conv1 (+ folded bn1 scale) -> bias -> relu
    h = jnp.maximum(conv3x3(x, t1_ref) + b1_ref[...], 0.0)       # (M, L_out)
    # conv2 (+ folded bn2 scale) -> bias -> residual -> relu
    o = jnp.maximum(conv3x3(h, t2_ref) + b2_ref[...] + x, 0.0)   # (M, L_in)

    o_ref[...] = o.reshape(NB, H, L_in).astype(o_ref.dtype)


# ----------------------------------------------------------------------------
# One-time weight preparation (hoisted out of the per-forward path)
# ----------------------------------------------------------------------------
def _toeplitz_weights(w_tap, width):
    """Per-kh banded conv weights.

    w_tap : (3, 3, Ci, Co) tap-major weights (kh, kw, in, out)
    returns (3, width*Ci, width*Co) with
        T[kh, p*Ci+ci, x*Co+co] = w_tap[kh, kw, ci, co], p = x + kw - 1,
    clipped at the W boundary (implements padding=1 along W).
    """
    ci, co = w_tap.shape[2], w_tap.shape[3]
    rows = []
    for kh in range(3):
        t = jnp.zeros((width * ci, width * co), w_tap.dtype)
        for kw in range(3):
            e = jnp.eye(width, width, k=1 - kw, dtype=w_tap.dtype)
            t = t + jnp.kron(e, w_tap[kh, kw])
        rows.append(t)
    return jnp.stack(rows)


def prepare_block_params(params, width, pack=1, eps=1e-5,
                         matmul_dtype=jnp.float32):
    """Fold eval-mode BN into the conv weights and build the banded (and
    optionally lane-packed block-diagonal) weight matrices. Call once per
    weight set and reuse across forwards."""
    Cout = params["w1"].shape[0]
    Cin = params["w2"].shape[0]

    s1 = params["g1"] / jnp.sqrt(params["v1"] + eps)
    b1 = params["b1"] - params["m1"] * s1
    s2 = params["g2"] / jnp.sqrt(params["v2"] + eps)
    b2 = params["b2"] - params["m2"] * s2

    # OIHW -> tap-major (kh, kw, I, O) with BN scale folded over O.
    w1_tap = jnp.transpose(params["w1"], (2, 3, 1, 0)) * s1[None, None, None, :]
    w2_tap = jnp.transpose(params["w2"], (2, 3, 1, 0)) * s2[None, None, None, :]

    t1 = _toeplitz_weights(w1_tap, width)        # (3, W*Cin,  W*Cout)
    t2 = _toeplitz_weights(w2_tap, width)        # (3, W*Cout, W*Cin)
    if pack > 1:                                 # lane-pack: block-diagonal
        eyep = jnp.eye(pack, dtype=t1.dtype)
        t1 = jnp.stack([jnp.kron(eyep, t1[kh]) for kh in range(3)])
        t2 = jnp.stack([jnp.kron(eyep, t2[kh]) for kh in range(3)])

    t1 = t1.astype(matmul_dtype)
    t2 = t2.astype(matmul_dtype)
    b1_row = jnp.tile(b1, pack * width).reshape(1, pack * width * Cout)
    b2_row = jnp.tile(b2, pack * width).reshape(1, pack * width * Cin)
    return {"t1": t1, "b1": b1_row.astype(jnp.float32),
            "t2": t2, "b2": b2_row.astype(jnp.float32)}


# ----------------------------------------------------------------------------
# Blocking heuristics
# ----------------------------------------------------------------------------
def _largest_divisor_leq(n, cap):
    cap = max(1, min(n, cap))
    for d in range(cap, 0, -1):
        if n % d == 0:
            return d
    return 1


def _choose_pack(n_images, lane_width):
    """Smallest divisor P of N with P*lane_width >= 128 lanes (unmasked vst)."""
    if lane_width >= 128:
        return 1
    best = 1
    for p in range(1, n_images + 1):
        if n_images % p == 0:
            best = p
            if p * lane_width >= 128:
                return p
    return best


def _choose_nb(n_groups, H, L_in):
    """Image-groups per grid step: target >=512 KiB input blocks, bound rows
    (live intermediates), keep >=2 grid steps for megacore sharding."""
    group_bytes = H * L_in * 4
    by_bytes = max(1, -(-(512 * 1024) // group_bytes))
    by_rows = max(1, 256 // H)
    cap = min(by_bytes, by_rows)
    if n_groups >= 2:
        cap = min(cap, n_groups // 2)
    return _largest_divisor_leq(n_groups, cap)


# ----------------------------------------------------------------------------
# Fused forward on the slab layout (what a full network would call per block)
# ----------------------------------------------------------------------------
def basic_block_resize_slab(x_slab, t1, b1_row, t2, b2_row):
    """x_slab: (G, H, L_in) lane-packed row slabs. Returns the same layout."""
    G, H, L_in = x_slab.shape
    L_out = t1.shape[-1]
    NB = _choose_nb(G, H, L_in)
    n_steps = G // NB

    itemsize = jnp.dtype(t1.dtype).itemsize
    vmem_limit = int(min(
        64 * 1024 * 1024,
        max(16 * 1024 * 1024,
            4 * NB * H * L_in * 4                      # double-buffered in/out
            + 8 * NB * H * max(L_in, L_out) * 4        # intermediates headroom
            + 2 * (t1.size + t2.size) * itemsize
            + (b1_row.size + b2_row.size) * 4)))

    return pl.pallas_call(
        basic_block_resize_kernel,
        out_shape=jax.ShapeDtypeStruct((G, H, L_in), x_slab.dtype),
        grid=(n_steps,),
        in_specs=[
            pl.BlockSpec((NB, H, L_in), lambda n: (n, 0, 0)),
            pl.BlockSpec(t1.shape, lambda n: (0, 0, 0)),
            pl.BlockSpec(b1_row.shape, lambda n: (0, 0)),
            pl.BlockSpec(t2.shape, lambda n: (0, 0, 0)),
            pl.BlockSpec(b2_row.shape, lambda n: (0, 0)),
        ],
        out_specs=pl.BlockSpec((NB, H, L_in), lambda n: (n, 0, 0)),
        compiler_params=pltpu.CompilerParams(
            dimension_semantics=("parallel",),
            vmem_limit_bytes=vmem_limit,
        ),
    )(x_slab, t1, b1_row, t2, b2_row)


# ----------------------------------------------------------------------------
# NCHW <-> slab interop (only for boundaries / testing; keep activations in
# slab layout between blocks in a real network)
# ----------------------------------------------------------------------------
def nchw_to_slab(x_nchw, pack):
    N, C, H, W = x_nchw.shape
    G = N // pack
    x = jnp.transpose(x_nchw, (0, 2, 3, 1)).reshape(G, pack, H, W * C)
    return jnp.transpose(x, (0, 2, 1, 3)).reshape(G, H, pack * W * C)


def slab_to_nchw(x_slab, n_images, channels, pack):
    G, H, L = x_slab.shape
    W = L // (pack * channels)
    x = x_slab.reshape(G, H, pack, W * channels)
    x = jnp.transpose(x, (0, 2, 1, 3)).reshape(n_images, H, W, channels)
    return jnp.transpose(x, (0, 3, 1, 2))


# ----------------------------------------------------------------------------
# Pure-JAX NCHW reference (PyTorch forward, eval-mode BN)
# ----------------------------------------------------------------------------
def reference(x, p, eps=1e-5):
    def conv(x, w):
        return jax.lax.conv_general_dilated(
            x, w, window_strides=(1, 1), padding=((1, 1), (1, 1)),
            dimension_numbers=("NCHW", "OIHW", "NCHW"))

    def bn(x, g, b, m, v):
        g, b, m, v = (t[None, :, None, None] for t in (g, b, m, v))
        return (x - m) / jnp.sqrt(v + eps) * g + b

    out = jax.nn.relu(bn(conv(x, p["w1"]), p["g1"], p["b1"], p["m1"], p["v1"]))
    out = bn(conv(out, p["w2"]), p["g2"], p["b2"], p["m2"], p["v2"])
    return jax.nn.relu(out + x)


if __name__ == "__main__":
    # Small CIFAR-block-like shapes; N=8 so the batch splits into >=2 grid
    # steps (megacore) after lane-packing 2 images per row (64 -> 128 lanes).
    N, Cin, Cout, H, W = 8, 4, 8, 16, 16

    key = jax.random.PRNGKey(0)
    keys = jax.random.split(key, 12)

    params = {
        # conv1: in_planes -> out_planes ; conv2: out_planes -> in_planes
        "w1": 0.1 * jax.random.normal(keys[0], (Cout, Cin, 3, 3), jnp.float32),
        "w2": 0.1 * jax.random.normal(keys[1], (Cin, Cout, 3, 3), jnp.float32),
        "g1": 1.0 + 0.1 * jax.random.normal(keys[2], (Cout,), jnp.float32),
        "b1": 0.1 * jax.random.normal(keys[3], (Cout,), jnp.float32),
        "m1": 0.1 * jax.random.normal(keys[4], (Cout,), jnp.float32),
        "v1": 0.5 + jnp.abs(jax.random.normal(keys[5], (Cout,), jnp.float32)),
        "g2": 1.0 + 0.1 * jax.random.normal(keys[6], (Cin,), jnp.float32),
        "b2": 0.1 * jax.random.normal(keys[7], (Cin,), jnp.float32),
        "m2": 0.1 * jax.random.normal(keys[8], (Cin,), jnp.float32),
        "v2": 0.5 + jnp.abs(jax.random.normal(keys[9], (Cin,), jnp.float32)),
    }

    x = jax.random.normal(keys[10], (N, Cin, H, W), jnp.float32)

    # One-time prep (hoisted out of the forward path).
    P = _choose_pack(N, W * Cin)                       # lane-pack factor
    prep = prepare_block_params(params, W, pack=P)     # matmul_dtype=jnp.bfloat16 for v6e/v5e

    # Layout conversion only at the network boundary.
    x_slab = nchw_to_slab(x, P)
    out_slab = basic_block_resize_slab(
        x_slab, prep["t1"], prep["b1"], prep["t2"], prep["b2"])
    out_slab = jax.block_until_ready(out_slab)
    out = slab_to_nchw(out_slab, N, Cin, P)

    ref = jax.block_until_ready(reference(x, params))
    assert out.shape == (N, Cin, H, W)
    assert jnp.allclose(out, ref, atol=2e-3, rtol=2e-3), \
        f"max abs err {jnp.max(jnp.abs(out - ref))}"

    print("KERNEL_OK")
</pallas_src>

<mosaic_0001>
module attributes {stable_mosaic.version = 11 : i64} {
  func.func @basic_block_resize_kernel(%arg0: i32, %arg1: memref<2x16x128xf32, #tpu.memory_space<vmem>>, %arg2: memref<3x128x256xf32, #tpu.memory_space<vmem>>, %arg3: memref<1x256xf32, #tpu.memory_space<vmem>>, %arg4: memref<3x256x128xf32, #tpu.memory_space<vmem>>, %arg5: memref<1x128xf32, #tpu.memory_space<vmem>>, %arg6: memref<2x16x128xf32, #tpu.memory_space<vmem>>) attributes {dimension_semantics = [#tpu.dimension_semantics<parallel>], iteration_bounds = array<i64: 2>, scalar_prefetch = 0 : i64, scratch_operands = 0 : i64, tpu.core_type = #tpu.core_type<tc>, window_params = [{transform_indices = @transform_0, window_bounds = array<i64: 2, 16, 128>}, {pipeline_mode = #tpu.pipeline_mode<synchronous>, transform_indices = @transform_1, window_bounds = array<i64: 3, 128, 256>}, {pipeline_mode = #tpu.pipeline_mode<synchronous>, transform_indices = @transform_2, window_bounds = array<i64: 1, 256>}, {pipeline_mode = #tpu.pipeline_mode<synchronous>, transform_indices = @transform_3, window_bounds = array<i64: 3, 256, 128>}, {pipeline_mode = #tpu.pipeline_mode<synchronous>, transform_indices = @transform_4, window_bounds = array<i64: 1, 128>}, {transform_indices = @transform_5, window_bounds = array<i64: 2, 16, 128>}]} {
    %c0 = arith.constant 0 : index
    %c0_0 = arith.constant 0 : index
    %c0_1 = arith.constant 0 : index
    %0 = vector.load %arg1[%c0, %c0_0, %c0_1] : memref<2x16x128xf32, #tpu.memory_space<vmem>>, vector<2x16x128xf32>
    %1 = vector.shape_cast %0 : vector<2x16x128xf32> to vector<32x128xf32>
    %2 = tpu.iota {dimensions = array<i32: 1>} : vector<2x16x1xi32>
    %3 = vector.shape_cast %2 : vector<2x16x1xi32> to vector<32x1xi32>
    %c0_i32 = arith.constant 0 : i32
    %4 = vector.broadcast %c0_i32 : i32 to vector<32x1xi32>
    %5 = arith.cmpi eq, %3, %4 : vector<32x1xi32>
    %c15_i32 = arith.constant 15 : i32
    %6 = vector.broadcast %c15_i32 : i32 to vector<32x1xi32>
    %7 = arith.cmpi eq, %3, %6 : vector<32x1xi32>
    %c1_i32 = arith.constant 1 : i32
    %8 = tpu.dynamic_rotate %1 by %c1_i32 dim 0 : vector<32x128xf32>, i32 -> vector<32x128xf32>
    %cst = arith.constant 0.000000e+00 : f32
    %9 = vector.shape_cast %5 : vector<32x1xi1> to vector<32x1xi1>
    %10 = vector.broadcast %9 : vector<32x1xi1> to vector<32x128xi1>
    %11 = vector.broadcast %cst : f32 to vector<32x128xf32>
    %12 = arith.select %10, %11, %8 : vector<32x128xi1>, vector<32x128xf32>
    %c0_2 = arith.constant 0 : index
    %c0_3 = arith.constant 0 : index
    %c0_4 = arith.constant 0 : index
    %13 = vector.load %arg2[%c0_2, %c0_3, %c0_4] : memref<3x128x256xf32, #tpu.memory_space<vmem>>, vector<1x128x256xf32>
    %14 = vector.shape_cast %13 : vector<1x128x256xf32> to vector<128x256xf32>
    %cst_5 = arith.constant dense<0.000000e+00> : vector<32x256xf32>
    %15 = tpu.matmul %12, %14, %cst_5 {dimension_numbers = #tpu.dot_dimension_numbers<[1], [0], [0], [1], [0, 0, 1, 1], [], []>} : vector<32x128xf32>, vector<128x256xf32>, vector<32x256xf32> -> vector<32x256xf32>
    %c1 = arith.constant 1 : index
    %c0_6 = arith.constant 0 : index
    %c0_7 = arith.constant 0 : index
    %16 = vector.load %arg2[%c1, %c0_6, %c0_7] : memref<3x128x256xf32, #tpu.memory_space<vmem>>, vector<1x128x256xf32>
    %17 = vector.shape_cast %16 : vector<1x128x256xf32> to vector<128x256xf32>
    %cst_8 = arith.constant dense<0.000000e+00> : vector<32x256xf32>
    %18 = tpu.matmul %1, %17, %cst_8 {dimension_numbers = #tpu.dot_dimension_numbers<[1], [0], [0], [1], [0, 0, 1, 1], [], []>} : vector<32x128xf32>, vector<128x256xf32>, vector<32x256xf32> -> vector<32x256xf32>
    %19 = arith.addf %15, %18 : vector<32x256xf32>
    %c31_i32 = arith.constant 31 : i32
    %20 = tpu.dynamic_rotate %1 by %c31_i32 dim 0 : vector<32x128xf32>, i32 -> vector<32x128xf32>
    %cst_9 = arith.constant 0.000000e+00 : f32
    %21 = vector.shape_cast %7 : vector<32x1xi1> to vector<32x1xi1>
    %22 = vector.broadcast %21 : vector<32x1xi1> to vector<32x128xi1>
    %23 = vector.broadcast %cst_9 : f32 to vector<32x128xf32>
    %24 = arith.select %22, %23, %20 : vector<32x128xi1>, vector<32x128xf32>
    %c2 = arith.constant 2 : index
    %c0_10 = arith.constant 0 : index
    %c0_11 = arith.constant 0 : index
    %25 = vector.load %arg2[%c2, %c0_10, %c0_11] : memref<3x128x256xf32, #tpu.memory_space<vmem>>, vector<1x128x256xf32>
    %26 = vector.shape_cast %25 : vector<1x128x256xf32> to vector<128x256xf32>
    %cst_12 = arith.constant dense<0.000000e+00> : vector<32x256xf32>
    %27 = tpu.matmul %24, %26, %cst_12 {dimension_numbers = #tpu.dot_dimension_numbers<[1], [0], [0], [1], [0, 0, 1, 1], [], []>} : vector<32x128xf32>, vector<128x256xf32>, vector<32x256xf32> -> vector<32x256xf32>
    %28 = arith.addf %19, %27 : vector<32x256xf32>
    %c0_13 = arith.constant 0 : index
    %c0_14 = arith.constant 0 : index
    %29 = vector.load %arg3[%c0_13, %c0_14] : memref<1x256xf32, #tpu.memory_space<vmem>>, vector<1x256xf32>
    %30 = vector.broadcast %29 : vector<1x256xf32> to vector<32x256xf32>
    %31 = arith.addf %28, %30 : vector<32x256xf32>
    %cst_15 = arith.constant 0.000000e+00 : f32
    %32 = vector.broadcast %cst_15 : f32 to vector<32x256xf32>
    %33 = arith.maximumf %31, %32 : vector<32x256xf32>
    %c1_i32_16 = arith.constant 1 : i32
    %34 = tpu.dynamic_rotate %33 by %c1_i32_16 dim 0 : vector<32x256xf32>, i32 -> vector<32x256xf32>
    %cst_17 = arith.constant 0.000000e+00 : f32
    %35 = vector.shape_cast %5 : vector<32x1xi1> to vector<32x1xi1>
    %36 = vector.broadcast %35 : vector<32x1xi1> to vector<32x256xi1>
    %37 = vector.broadcast %cst_17 : f32 to vector<32x256xf32>
    %38 = arith.select %36, %37, %34 : vector<32x256xi1>, vector<32x256xf32>
    %c0_18 = arith.constant 0 : index
    %c0_19 = arith.constant 0 : index
    %c0_20 = arith.constant 0 : index
    %39 = vector.load %arg4[%c0_18, %c0_19, %c0_20] : memref<3x256x128xf32, #tpu.memory_space<vmem>>, vector<1x256x128xf32>
    %40 = vector.shape_cast %39 : vector<1x256x128xf32> to vector<256x128xf32>
    %cst_21 = arith.constant dense<0.000000e+00> : vector<32x128xf32>
    %41 = tpu.matmul %38, %40, %cst_21 {dimension_numbers = #tpu.dot_dimension_numbers<[1], [0], [0], [1], [0, 0, 1, 1], [], []>} : vector<32x256xf32>, vector<256x128xf32>, vector<32x128xf32> -> vector<32x128xf32>
    %c1_22 = arith.constant 1 : index
    %c0_23 = arith.constant 0 : index
    %c0_24 = arith.constant 0 : index
    %42 = vector.load %arg4[%c1_22, %c0_23, %c0_24] : memref<3x256x128xf32, #tpu.memory_space<vmem>>, vector<1x256x128xf32>
    %43 = vector.shape_cast %42 : vector<1x256x128xf32> to vector<256x128xf32>
    %cst_25 = arith.constant dense<0.000000e+00> : vector<32x128xf32>
    %44 = tpu.matmul %33, %43, %cst_25 {dimension_numbers = #tpu.dot_dimension_numbers<[1], [0], [0], [1], [0, 0, 1, 1], [], []>} : vector<32x256xf32>, vector<256x128xf32>, vector<32x128xf32> -> vector<32x128xf32>
    %45 = arith.addf %41, %44 : vector<32x128xf32>
    %c31_i32_26 = arith.constant 31 : i32
    %46 = tpu.dynamic_rotate %33 by %c31_i32_26 dim 0 : vector<32x256xf32>, i32 -> vector<32x256xf32>
    %cst_27 = arith.constant 0.000000e+00 : f32
    %47 = vector.shape_cast %7 : vector<32x1xi1> to vector<32x1xi1>
    %48 = vector.broadcast %47 : vector<32x1xi1> to vector<32x256xi1>
    %49 = vector.broadcast %cst_27 : f32 to vector<32x256xf32>
    %50 = arith.select %48, %49, %46 : vector<32x256xi1>, vector<32x256xf32>
    %c2_28 = arith.constant 2 : index
    %c0_29 = arith.constant 0 : index
    %c0_30 = arith.constant 0 : index
    %51 = vector.load %arg4[%c2_28, %c0_29, %c0_30] : memref<3x256x128xf32, #tpu.memory_space<vmem>>, vector<1x256x128xf32>
    %52 = vector.shape_cast %51 : vector<1x256x128xf32> to vector<256x128xf32>
    %cst_31 = arith.constant dense<0.000000e+00> : vector<32x128xf32>
    %53 = tpu.matmul %50, %52, %cst_31 {dimension_numbers = #tpu.dot_dimension_numbers<[1], [0], [0], [1], [0, 0, 1, 1], [], []>} : vector<32x256xf32>, vector<256x128xf32>, vector<32x128xf32> -> vector<32x128xf32>
    %54 = arith.addf %45, %53 : vector<32x128xf32>
    %c0_32 = arith.constant 0 : index
    %c0_33 = arith.constant 0 : index
    %55 = vector.load %arg5[%c0_32, %c0_33] : memref<1x128xf32, #tpu.memory_space<vmem>>, vector<1x128xf32>
    %56 = vector.broadcast %55 : vector<1x128xf32> to vector<32x128xf32>
    %57 = arith.addf %54, %56 : vector<32x128xf32>
    %58 = arith.addf %57, %1 : vector<32x128xf32>
    %cst_34 = arith.constant 0.000000e+00 : f32
    %59 = vector.broadcast %cst_34 : f32 to vector<32x128xf32>
    %60 = arith.maximumf %58, %59 : vector<32x128xf32>
    %61 = vector.shape_cast %60 : vector<32x128xf32> to vector<2x16x128xf32>
    %c0_35 = arith.constant 0 : index
    %c0_36 = arith.constant 0 : index
    %c0_37 = arith.constant 0 : index
    %62 = vector.load %arg6[%c0_35, %c0_36, %c0_37] : memref<2x16x128xf32, #tpu.memory_space<vmem>>, vector<2x16x128xf32>
    tpu.vector_store %arg6[%c0_35, %c0_36, %c0_37], %61 {strides = array<i32>} : memref<2x16x128xf32, #tpu.memory_space<vmem>>, vector<2x16x128xf32>,
    return
  }
  func.func @transform_0(%arg0: i32) -> (i32, i32, i32) {
    %c0_i32 = arith.constant 0 : i32
    %c0_i32_0 = arith.constant 0 : i32
    %c0_i32_1 = arith.constant 0 : i32
    return %arg0, %c0_i32, %c0_i32_0 : i32, i32, i32
  }
  func.func @transform_1(%arg0: i32) -> (i32, i32, i32) {
    %c0_i32 = arith.constant 0 : i32
    %c0_i32_0 = arith.constant 0 : i32
    %c0_i32_1 = arith.constant 0 : i32
    %c0_i32_2 = arith.constant 0 : i32
    return %c0_i32, %c0_i32_0, %c0_i32_1 : i32, i32, i32
  }
  func.func @transform_2(%arg0: i32) -> (i32, i32) {
    %c0_i32 = arith.constant 0 : i32
    %c0_i32_0 = arith.constant 0 : i32
    %c0_i32_1 = arith.constant 0 : i32
    return %c0_i32, %c0_i32_0 : i32, i32
  }
  func.func @transform_3(%arg0: i32) -> (i32, i32, i32) {
    %c0_i32 = arith.constant 0 : i32
    %c0_i32_0 = arith.constant 0 : i32
    %c0_i32_1 = arith.constant 0 : i32
    %c0_i32_2 = arith.constant 0 : i32
    return %c0_i32, %c0_i32_0, %c0_i32_1 : i32, i32, i32
  }
  func.func @transform_4(%arg0: i32) -> (i32, i32) {
    %c0_i32 = arith.constant 0 : i32
    %c0_i32_0 = arith.constant 0 : i32
    %c0_i32_1 = arith.constant 0 : i32
    return %c0_i32, %c0_i32_0 : i32, i32
  }
  func.func @transform_5(%arg0: i32) -> (i32, i32, i32) {
    %c0_i32 = arith.constant 0 : i32
    %c0_i32_0 = arith.constant 0 : i32
    %c0_i32_1 = arith.constant 0 : i32
    return %arg0, %c0_i32, %c0_i32_0 : i32, i32, i32
  }
}

</mosaic_0001>

<bundles_post_ra>
// kernel: tpu_custom_call.1
= control target key start
LH: loop header
LB: loop body
LE: loop exit
PB: predicated region body
PF: predicated region fallthrough
CT: control target
= control target key end

     0   :  { %10 = vsyncpa [#allocation3], 0  ;;  %s2365_s0 = inlined_call_operand.hbm [shape: f32[4,16,128], index: 0, kind: input, shape index: {}]   ;;  %s2366_s1 = inlined_call_operand.hbm [shape: f32[3,128,256], index: 1, kind: input, shape index: {}]   ;;  %s2367_s2 = inlined_call_operand.vmem [shape: f32[1,256], index: 2, kind: input, shape index: {}]   ;;  %s2368_s3 = inlined_call_operand.hbm [shape: f32[3,256,128], index: 3, kind: input, shape index: {}]   ;;  %s2369_s4 = inlined_call_operand.vmem [shape: f32[1,128], index: 4, kind: input, shape index: {}]   ;;  %s2370_s5 = inlined_call_operand.hbm [shape: f32[4,16,128], index: 5, kind: output, shape index: {}]  }
   0x1   :  { %12 = vsyncpa [#allocation3 + $0x1], 0 }
   0x2   :  { %13 = vsyncpa [#allocation6], 0 }
   0x3   :  { %14 = vsyncpa [#allocation4], 0 }
   0x4   :  { %16 = vsyncpa [#allocation4 + $0x1], 0  ;;  %s1920_s18 = smov 0   ;;  %s1922_s19 = smov 0  }
   0x5   :  { %s1924_s20 = smov 0   ;;  %s1926_s21 = smov 0  }
   0x6 LB: > { %s1941_s22 = sadd.s32 4294967295, %s1877_s21   ;;  %s1256_s23 = sadd.s32 4294967294, %s1877_s21   ;;  %s1877_s21 = sphi %s1926_s21, %s2390_s21   ;;  %s1873_s20 = sphi %s1924_s20, %s2389_s20   ;;  %s1869_s19 = sphi %s1922_s19, %s2388_s19   ;;  %s1865_s18 = sphi %s1920_s18, %s2387_s18  }
   0x7   : > { %p42_p0 = scmp.ne.s32.totalorder %s1869_s19, %s1865_s18  ;;  %p2371_p1 = scmp.eq.s32.totalorder %s1941_s22, 0 }
   0x8   : > { %p156_p3 = scmp.eq.s32.totalorder %s1256_s23, 1  ;;  %p1257_p5 = scmp.ge.s32.totalorder %s1877_s21, 1 }
   0x9   : > { %p1950_p4 = por %p2371_p1, %p42_p0  ;;  %p163_p7 = scmp.lt.s32.totalorder %s1877_s21, 3 }
   0xa   : > { %p1955_p6 = por %p156_p3, %p42_p0  ;;  %s1879_s27 = smov [#allocation5]  }
   0xb   : > { %s2374_s24 = scalar_select %p1950_p4, 1, 0 }
   0xc   : > { %s2375_s25 = scalar_select %p1955_p6, 1, 0 }
   0xd   : > { %p1960_p8 = pnand %p1257_p5, %p163_p7  ;;  %s175_s28 = sshll.u32 %s1879_s27, 4  ;;  %s1964_s28 = int_to_ptr.vmem [resolvable:$true] %s175_s28 }
   0xe   : > { %s1880_s30 = smov [#allocation7]   ;;  %s1721_s9 = scalar_lea.hbm %s2366_s1, 12288 }
   0xf   : > { %p1659_p9 = pneg %p1960_p8  ;;  %s191_s6 = sshll.u32 %s1880_s30, 4  ;;  %s1975_s6 = int_to_ptr.vmem [resolvable:$true] %s191_s6 }
  0x10   : > { %p1722_p12 = scmp.ne.s32.totalorder %s2366_s1, %s1721_s9  ;;  %p1728_p5 = scmp.lt.u32.totalorder %s1721_s9, %s2366_s1 }
  0x11   : > { %p1971_p11 = pnand %p1659_p9, %p2371_p1 }
  0x13   : > { %p1723_p13 = pneg %p1971_p11 }
  0x15   : > { %p1724_p0 = pnand %p1723_p13, %p1722_p12 }
  0x17   : > { %p1725_p3 = pneg %p1724_p0 }
  0x19   : > { %p1730_p7 = pnand %p1728_p5, %p1725_p3 }
  0x1b   : > { %1733 = shalt.err (!%p1730_p7)
}
  0x1c   : > { %s1734_s14 = scalar_lea.vmem %s1964_s28, 12288  ;;  %p1742_p2 = scmp.lt.s32.totalorder %s1964_s28, %s1964_s28 }
  0x1d   : > { %p1735_p9 = scmp.ne.s32.totalorder %s1964_s28, %s1734_s14  ;;  %p1743_p12 = scmp.lt.s32.totalorder %s1734_s14, %s1734_s14 }
  0x1f   : > { %p1737_p10 = pnand %p1735_p9, %p1723_p13  ;;  %p1744_p0 = por %p1743_p12, %p1742_p2 }
  0x21   : > { %p1738_p1 = pneg %p1737_p10 }
  0x23   : > { %p1745_p6 = pnand %p1744_p0, %p1738_p1 }
  0x25   : > { %1748 = shalt.err (!%p1745_p6)
}
  0x26   : > { %s1881_s15 = smov 256   ;;  %s1882_s16 = smov 16  }
  0x27   : > { %1662 = dma.hbm_to_vmem [thread:$0]  (!%p1971_p11), %s2366_s1, 12288, %s1964_s28, [#allocation6], %s1881_s15, %s1881_s15, %s1882_s16  }
  0x28   : > { %s1749_s7 = scalar_lea.hbm %s2368_s3, 12288 }
  0x29   : > { %p1750_p2 = scmp.ne.s32.totalorder %s2368_s3, %s1749_s7  ;;  %p1756_p10 = scmp.lt.u32.totalorder %s1749_s7, %s2368_s3 }
  0x2b   : > { %p1752_p1 = pnand %p1750_p2, %p1723_p13 }
  0x2d   : > { %p1753_p6 = pneg %p1752_p1 }
  0x2f   : > { %p1758_p3 = pnand %p1756_p10, %p1753_p6 }
  0x31   : > { %1761 = shalt.err (!%p1758_p3)
}
  0x32   : > { %s1762_s28 = scalar_lea.vmem %s1975_s6, 12288  ;;  %p1770_p12 = scmp.lt.s32.totalorder %s1975_s6, %s1975_s6 }
  0x33   : > { %p1763_p5 = scmp.ne.s32.totalorder %s1975_s6, %s1762_s28  ;;  %p1771_p0 = scmp.lt.s32.totalorder %s1762_s28, %s1762_s28 }
  0x35   : > { %p1765_p7 = pnand %p1763_p5, %p1723_p13  ;;  %p1772_p2 = por %p1771_p0, %p1770_p12 }
  0x37   : > { %p1766_p9 = pneg %p1765_p7 }
  0x39   : > { %p1773_p1 = pnand %p1772_p2, %p1766_p9 }
  0x3b   : > { %1776 = shalt.err (!%p1773_p1)
}
  0x3c   : > { %s1883_s12 = smov 128   ;;  %s1884_s13 = smov 8  }
  0x3d   : > { %1665 = dma.hbm_to_vmem [thread:$0]  (!%p1971_p11), %s2368_s3, 12288, %s1975_s6, [#allocation6], %s1883_s12, %s1883_s12, %s1884_s13  }
  0x3e   : > { %s2033_s16 = sadd.s32 1, %s1877_s21   ;;  %s29_s23 = sadd.s32 1, %s1873_s20 }
  0x3f   : > { %s26_s17 = ssub.s32 %s1877_s21, %s2033_s16  ;;  %p36_p6 = scmp.ne.s32.totalorder %s1873_s20, %s1869_s19 }
  0x40   : > { %p27_p13 = scmp.eq.s32.totalorder %s26_s17, 0  ;;  %p37_p10 = scmp.eq.s32.totalorder %s1877_s21, 0 }
  0x41   : > { %p2378_p5 = scmp.eq.s32.totalorder %s1941_s22, 1  ;;  %p1676_p9 = scmp.lt.s32.totalorder %s1877_s21, 2 }
  0x42   : > { %s2042_s27 = scalar_select %p27_p13, %s1873_s20, %s29_s23  }
  0x43   : > { %p38_p3 = por %p37_p10, %p36_p6  ;;  %p2046_p7 = por %p2378_p5, %p36_p6 }
  0x44   : > { %s208_s30 = sand.u32 1, %s1873_s20   ;;  %s1302_s6 = sshll.u32 %s1877_s21, 9 }
  0x45   : > { %s2379_s29 = scalar_select %p2046_p7, 1, 0 }
  0x46   : > { %s1261_s7 = sshll.u32 %s208_s30, 5  ;;  %s2056_s10 = scalar_lea.hbm %s2365_s0, %s1302_s6 }
  0x47   : > { %s212_s11 = scalar_lea.vmem [#allocation2], %s1261_s7  ;;  %p2060_p11 = pnand %p1676_p9, %p38_p3 }
  0x48   : > { %s220_s28 = sshll.u32 %s212_s11, 4  ;;  %s2064_s15 = scalar_lea.sflag [#allocation3], %s208_s30  ;;  %s2058_s28 = int_to_ptr.vmem [resolvable:$true] %s220_s28 }
  0x49   : > { %s1777_s17 = scalar_lea.hbm %s2056_s10, 512  ;;  %p1779_p0 = pneg %p2060_p11 }
  0x4a   : > { %p1778_p12 = scmp.ne.s32.totalorder %s2056_s10, %s1777_s17  ;;  %s1782_s6 = scalar_lea.hbm %s2365_s0, 1024 }
  0x4b   : > { %p1783_p13 = scmp.lt.u32.totalorder %s2056_s10, %s2365_s0  ;;  %p1784_p6 = scmp.lt.u32.totalorder %s1782_s6, %s1777_s17 }
  0x4c   : > { %p1780_p2 = pnand %p1779_p0, %p1778_p12  ;;  %p1786_p3 = scmp.lt.u32.totalorder %s1777_s17, %s2056_s10 }
  0x4d   : > { %p1785_p10 = por %p1784_p6, %p1783_p13 }
  0x4e   : > { %p1781_p1 = pneg %p1780_p2 }
  0x4f   : > { %p1787_p5 = por %p1786_p3, %p1785_p10 }
  0x51   : > { %p1788_p9 = pnand %p1787_p5, %p1781_p1 }
  0x53   : > { %1791 = shalt.err (!%p1788_p9)
}
  0x54   : > { %s1792_s30 = scalar_lea.vmem %s2058_s28, 512  ;;  %s1885_s11 = smov [#allocation2]  }
  0x55   : > { %p1793_p12 = scmp.ne.s32.totalorder %s2058_s28, %s1792_s30  ;;  %s1797_s23 = sshll.u32 %s1885_s11, 4  ;;  %s1798_s23 = int_to_ptr.vmem [resolvable:$false] %s1797_s23 }
  0x56   : > { %s1799_s7 = scalar_lea.vmem %s1798_s23, 1024  ;;  %p1800_p4 = scmp.lt.s32.totalorder %s2058_s28, %s1798_s23 }
  0x57   : > { %p1795_p2 = pnand %p1793_p12, %p1779_p0  ;;  %p1801_p13 = scmp.lt.s32.totalorder %s1799_s7, %s1792_s30 }
  0x59   : > { %p1796_p7 = pneg %p1795_p2  ;;  %p1802_p6 = por %p1801_p13, %p1800_p4 }
  0x5b   : > { %p1803_p10 = pnand %p1802_p6, %p1796_p7 }
  0x5d   : > { %1806 = shalt.err (!%p1803_p10)
}
  0x5e   : > { %1669 = dma.hbm_to_vmem [thread:$0]  (!%p2060_p11), %s2056_s10, 512, %s2058_s28, %s2064_s15, %s1883_s12, %s1883_s12, %s1884_s13  }
  0x5f   : > { %232 = sbr.rel (%p1960_p8) target bundleno = 737 (0x2e1), region = 40  ;;  %s2098_s17 = sand.u32 (!%p1960_p8), 1, %s1869_s19  }
  0x60   : > { %s1266_s6 = sshll.u32 (!%p1960_p8), %s2098_s17, 5  ;;  %s235_s8 = scalar_lea.sflag (!%p1960_p8), [#allocation3], %s2098_s17 }
  0x61   : > { %s2104_s14 = scalar_lea.vmem (!%p1960_p8), [#allocation2], %s1266_s6  ;;  %p2381_p4 = scmp.ne.s32.totalorder (!%p1960_p8), %s2374_s24, 0 }
  0x66   : > { %1852 = dma.done.wait (%p2381_p4), %s235_s8, 512  }
  0x67   : > { %1854 = vsyncadd (%p2381_p4), %s235_s8, 4294966784  ;;  %p2382_p7 = scmp.eq.s32.totalorder %s1941_s22, 0 }
  0x69   : > { %1856 = dma.done.wait (%p2382_p7), [#allocation6], 24576   ;;  %p2383_p8 = pmov %p2382_p7 }
  0x6a   : > { %v1886_v0 = vmov 0.0   ;;  %v337_v1 = vld [vmem:[#allocation5 + $0x108] sm:$0xff]  ;;  %v339_v2 = vld [vmem:[#allocation5 + $0x118] sm:$0xff]  ;;  %v336_v3 = vld [vmem:[#allocation5 + $0x100] sm:$0xff]  ;;  %s272_s10 = scalar_lea.vmem [#allocation8], %s1266_s6  ;;  %s1304_s15 = sshll.u32 %s1941_s22, 9 }
  0x6b   : > { %1858 = vsyncadd (%p2383_p8), [#allocation6], 4294942720  ;;  %432 = vmatprep.mubr.f32.mxu0 %v1886_v0  ;;  %v1439_v4 = vpack.c.bf16 %v339_v2, %v337_v1  ;;  %v338_v5 = vld [vmem:[#allocation5 + $0x110] sm:$0xff]  ;;  %v341_v6 = vld [vmem:[#allocation5 + $0x128] sm:$0xff]  ;;  %s1164_s28 = sshll.u32 %s272_s10, 4  ;;  %s2321_s11 = scalar_lea.hbm %s2370_s5, %s1304_s15  ;;  %s2315_s28 = int_to_ptr.vmem [resolvable:$true] %s1164_s28 }
  0x6c   : > { %v343_v7 = vld [vmem:[#allocation5 + $0x138] sm:$0xff]  ;;  %v1441_v8 = vpack.c.bf16 %v338_v5, %v336_v3  ;;  %v340_v10 = vld [vmem:[#allocation5 + $0x120] sm:$0xff]  ;;  %v342_v11 = vld [vmem:[#allocation5 + $0x130] sm:$0xff]  ;;  %s1150_s23 = scalar_lea.sflag [#allocation4], %s2098_s17  ;;  %s1807_s7 = scalar_lea.vmem %s2315_s28, 512 }
  0x6d   : > { %v1443_v9 = vpack.c.bf16 %v343_v7, %v341_v6  ;;  %v345_v12 = vld [vmem:[#allocation5 + $0x148] sm:$0xff]  ;;  %1440 = vmatprep.subr.bf16.mxu0 %v1439_v4  ;;  %v347_v13 = vld [vmem:[#allocation5 + $0x158] sm:$0xff]  ;;  %v1445_v14 = vpack.c.bf16 %v342_v11, %v340_v10  ;;  %v344_v16 = vld [vmem:[#allocation5 + $0x140] sm:$0xff]  ;;  %p1808_p11 = scmp.ne.s32.totalorder %s2315_s28, %s1807_s7  ;;  %p2384_p0 = scmp.ne.s32.totalorder %s2379_s29, 0 }
  0x6e   : > { %1442 = vmatpush1.bf16.msra.mxu0 %v1441_v8  ;;  %v1447_v15 = vpack.c.bf16 %v347_v13, %v345_v12  ;;  %v346_v17 = vld [vmem:[#allocation5 + $0x150] sm:$0xff]  ;;  %v349_v18 = vld [vmem:[#allocation5 + $0x168] sm:$0xff]  ;;  %v351_v19 = vld [vmem:[#allocation5 + $0x178] sm:$0xff]  ;;  %s1887_s22 = smov [#allocation8]  }
  0x6f   : > { %1444 = vmatprep.subr.bf16.mxu0 %v1443_v9  ;;  %v1449_v20 = vpack.c.bf16 %v346_v17, %v344_v16  ;;  %v1451_v21 = vpack.c.bf16 %v351_v19, %v349_v18  ;;  %v348_v22 = vld [vmem:[#allocation5 + $0x160] sm:$0xff]  ;;  %v350_v23 = vld [vmem:[#allocation5 + $0x170] sm:$0xff]  ;;  %v353_v24 = vld [vmem:[#allocation5 + $0x188] sm:$0xff]  ;;  %p1809_p1 = pnand %p1808_p11, %p2384_p0  ;;  %s1811_s6 = sshll.u32 %s1887_s22, 4  ;;  %s1812_s6 = int_to_ptr.vmem [resolvable:$false] %s1811_s6 }
  0x70   : > { %v355_v25 = vld [vmem:[#allocation5 + $0x198] sm:$0xff]  ;;  %v1453_v26 = vpack.c.bf16 %v350_v23, %v348_v22  ;;  %v352_v28 = vld [vmem:[#allocation5 + $0x180] sm:$0xff]  ;;  %v354_v29 = vld [vmem:[#allocation5 + $0x190] sm:$0xff]  ;;  %s1813_s8 = scalar_lea.vmem %s1812_s6, 1024  ;;  %p1814_p5 = scmp.lt.s32.totalorder %s2315_s28, %s1812_s6 }
  0x71   : > { %v1455_v27 = vpack.c.bf16 %v355_v25, %v353_v24  ;;  %v357_v30 = vld [vmem:[#allocation5 + $0x1a8] sm:$0xff]  ;;  %v359_v31 = vld [vmem:[#allocation5 + $0x1b8] sm:$0xff]  ;;  %v1457_v32 = vpack.c.bf16 %v354_v29, %v352_v28  ;;  %v356_v34 = vld [vmem:[#allocation5 + $0x1a0] sm:$0xff]  ;;  %p1810_p3 = pneg %p1809_p1  ;;  %p1815_p9 = scmp.lt.s32.totalorder %s1813_s8, %s1807_s7 }
  0x72   : > { %1446 = vmatpush1.bf16.msra.mxu0 %v1445_v14  ;;  %v1459_v33 = vpack.c.bf16 %v359_v31, %v357_v30  ;;  %v358_v35 = vld [vmem:[#allocation5 + $0x1b0] sm:$0xff]  ;;  %v361_v36 = vld [vmem:[#allocation5 + $0x1c8] sm:$0xff]  ;;  %v363_v37 = vld [vmem:[#allocation5 + $0x1d8] sm:$0xff] }
  0x73   : > { %1448 = vmatprep.subr.bf16.mxu0 %v1447_v15  ;;  %v1461_v38 = vpack.c.bf16 %v358_v35, %v356_v34  ;;  %v1463_v39 = vpack.c.bf16 %v363_v37, %v361_v36  ;;  %v360_v40 = vld [vmem:[#allocation5 + $0x1c0] sm:$0xff]  ;;  %v362_v41 = vld [vmem:[#allocation5 + $0x1d0] sm:$0xff]  ;;  %v365_v42 = vld [vmem:[#allocation5 + $0x1e8] sm:$0xff]  ;;  %p1816_p12 = por %p1815_p9, %p1814_p5 }
  0x74   : > { %v367_v43 = vld [vmem:[#allocation5 + $0x1f8] sm:$0xff]  ;;  %v1465_v44 = vpack.c.bf16 %v362_v41, %v360_v40  ;;  %v364_v46 = vld [vmem:[#allocation5 + $0x1e0] sm:$0xff]  ;;  %v366_v47 = vld [vmem:[#allocation5 + $0x1f0] sm:$0xff] }
  0x75   : > { %v1467_v45 = vpack.c.bf16 %v367_v43, %v365_v42  ;;  %v304_v48 = vld [vmem:[#allocation5 + $0x8] sm:$0xff]  ;;  %v306_v49 = vld [vmem:[#allocation5 + $0x18] sm:$0xff]  ;;  %v1469_v50 = vpack.c.bf16 %v366_v47, %v364_v46  ;;  %v303_v52 = vld [vmem:[#allocation5] sm:$0xff]  ;;  %p1817_p2 = pnand %p1816_p12, %p1810_p3 }
  0x76   : > { %1450 = vmatpush1.bf16.msra.mxu0 %v1449_v20  ;;  %v1471_v51 = vpack.c.bf16 %v306_v49, %v304_v48  ;;  %v305_v53 = vld [vmem:[#allocation5 + $0x10] sm:$0xff]  ;;  %v308_v54 = vld [vmem:[#allocation5 + $0x28] sm:$0xff]  ;;  %v310_v55 = vld [vmem:[#allocation5 + $0x38] sm:$0xff] }
  0x77   : > { %1452 = vmatprep.subr.bf16.mxu0 %v1451_v21  ;;  %v2116_v56 = vld [vmem:[%s2104_s14] sm:$0xff]  ;;  %v1473_v57 = vpack.c.bf16 %v305_v53, %v303_v52  ;;  %v309_v59 = vld [vmem:[#allocation5 + $0x30] sm:$0xff]  ;;  %v312_v60 = vld [vmem:[#allocation5 + $0x48] sm:$0xff]  ;;  %v1475_v61 = vpack.c.bf16 %v310_v55, %v308_v54 }
  0x78   : > { %v307_v58 = vld [vmem:[#allocation5 + $0x20] sm:$0xff]  ;;  %v314_v62 = vld [vmem:[#allocation5 + $0x58] sm:$0xff]  ;;  %v795_v1 = vld [vmem:[#allocation7 + $0x188] sm:$0xff] }
  0x79   : > { %v794_v63 = vld [vmem:[#allocation7 + $0x180] sm:$0xff]  ;;  %v779_v4 = vld [vmem:[#allocation7 + $0x108] sm:$0xff]  ;;  %v796_v5 = vld [vmem:[#allocation7 + $0x190] sm:$0xff]  ;;  %v1477_v10 = vpack.c.bf16 %v309_v59, %v307_v58  ;;  %v1479_v15 = vpack.c.bf16 %v314_v62, %v312_v60 }
  0x7a   : > { %1454 = vmatpush1.bf16.msra.mxu0 %v1453_v26  ;;  %v1535_v2 = vpack.c.bf16 %v795_v1, %v794_v63  ;;  %v778_v3 = vld [vmem:[#allocation7 + $0x100] sm:$0xff]  ;;  %v797_v7 = vld [vmem:[#allocation7 + $0x198] sm:$0xff]  ;;  %v780_v8 = vld [vmem:[#allocation7 + $0x110] sm:$0xff] }
  0x7b   : > { %1456 = vmatprep.subr.bf16.mxu0 %v1455_v27  ;;  %v1537_v6 = vpack.c.bf16 %v779_v4, %v778_v3  ;;  %v781_v9 = vld [vmem:[#allocation7 + $0x118] sm:$0xff]  ;;  %v2121_v11 = vld [vmem:[%s2104_s14 + $0x8] sm:$0xff]  ;;  %v1539_v12 = vpack.c.bf16 %v797_v7, %v796_v5  ;;  %v798_v13 = vld [vmem:[#allocation7 + $0x1a0] sm:$0xff] }
  0x7c   : > { %v799_v14 = vld [vmem:[#allocation7 + $0x1a8] sm:$0xff]  ;;  %v311_v16 = vld [vmem:[#allocation5 + $0x40] sm:$0xff]  ;;  %v313_v17 = vld [vmem:[#allocation5 + $0x50] sm:$0xff]  ;;  %1536 = vmatprep.subr.bf16.mxu1 %v1535_v2  ;;  %v1541_v20 = vpack.c.bf16 %v781_v9, %v780_v8 }
  0x7d   : > { %v316_v18 = vld [vmem:[#allocation5 + $0x68] sm:$0xff]  ;;  %v318_v19 = vld [vmem:[#allocation5 + $0x78] sm:$0xff]  ;;  %1538 = vmatpush3.bf16.msra.mxu1 %v1537_v6  ;;  %v1543_v21 = vpack.c.bf16 %v799_v14, %v798_v13  ;;  %v782_v22 = vld [vmem:[#allocation7 + $0x120] sm:$0xff]  ;;  %v1481_v24 = vpack.c.bf16 %v313_v17, %v311_v16  ;;  %v279_v6 = vlaneseq }
  0x7e   : > { %1458 = vmatpush1.bf16.msra.mxu0 %v1457_v32  ;;  %1540 = vmatprep.subr.bf16.mxu1 %v1539_v12  ;;  %v783_v23 = vld [vmem:[#allocation7 + $0x128] sm:$0xff]  ;;  %v2126_v25 = vld [vmem:[%s2104_s14 + $0x10] sm:$0xff]  ;;  %v801_v27 = vld [vmem:[#allocation7 + $0x1b8] sm:$0xff]  ;;  %v1483_v28 = vpack.c.bf16 %v318_v19, %v316_v18 }
  0x7f   : > { %1460 = vmatprep.subr.bf16.mxu0 %v1459_v33  ;;  %v800_v26 = vld [vmem:[#allocation7 + $0x1b0] sm:$0xff]  ;;  %v315_v29 = vld [vmem:[#allocation5 + $0x60] sm:$0xff]  ;;  %v320_v31 = vld [vmem:[#allocation5 + $0x88] sm:$0xff]  ;;  %v1545_v33 = vpack.c.bf16 %v783_v23, %v782_v22  ;;  %v2135_v18 = vshrl.u32 %v279_v6, 7  ;;  %v286_v22 = vrot.slane %v2116_v56, 7 }
  0x80   : > { %v317_v30 = vld [vmem:[#allocation5 + $0x70] sm:$0xff]  ;;  %v322_v32 = vld [vmem:[#allocation5 + $0x98] sm:$0xff]  ;;  %v1547_v34 = vpack.c.bf16 %v801_v27, %v800_v26  ;;  %v803_v40 = vld [vmem:[#allocation7 + $0x1c8] sm:$0xff] }
  0x81   : > { %1542 = vmatpush3.bf16.msra.mxu1 %v1541_v20  ;;  %v784_v35 = vld [vmem:[#allocation7 + $0x130] sm:$0xff]  ;;  %v785_v36 = vld [vmem:[#allocation7 + $0x138] sm:$0xff]  ;;  %v1485_v37 = vpack.c.bf16 %v317_v30, %v315_v29  ;;  %v1487_v41 = vpack.c.bf16 %v322_v32, %v320_v31  ;;  %v319_v42 = vld [vmem:[#allocation5 + $0x80] sm:$0xff]  ;;  %vm290_vm0 = vcmp.lt.s32.totalorder %v2135_v18, 1  ;;  %vm1305_vm1 = vcmp.ne.s32.totalorder %v2135_v18, 0 }
  0x82   : > { %1462 = vmatpush1.bf16.msra.mxu0 %v1461_v38  ;;  %1544 = vmatprep.subr.bf16.mxu1 %v1543_v21  ;;  %v2131_v38 = vld [vmem:[%s2104_s14 + $0x18] sm:$0xff]  ;;  %v321_v43 = vld [vmem:[#allocation5 + $0x90] sm:$0xff]  ;;  %v1549_v46 = vpack.c.bf16 %v785_v36, %v784_v35  ;;  %v786_v48 = vld [vmem:[#allocation7 + $0x140] sm:$0xff]  ;;  %vm550_vm2 = vcmp.lt.s32.totalorder %v2135_v18, 7 }
  0x83   : > { %1464 = vmatprep.subr.bf16.mxu0 %v1463_v39  ;;  %v802_v39 = vld [vmem:[#allocation7 + $0x1c0] sm:$0xff]  ;;  %v787_v49 = vld [vmem:[#allocation7 + $0x148] sm:$0xff]  ;;  %v805_v52 = vld [vmem:[#allocation7 + $0x1d8] sm:$0xff]  ;;  %v289_v23 = vrot.slane %v2131_v38, 7 }
  0x84   : > { %v1551_v47 = vpack.c.bf16 %v803_v40, %v802_v39  ;;  %v323_v54 = vld [vmem:[#allocation5 + $0xa0] sm:$0xff]  ;;  %v325_v55 = vld [vmem:[#allocation5 + $0xb0] sm:$0xff]  ;;  %v330_v58 = vld [vmem:[#allocation5 + $0xd8] sm:$0xff]  ;;  %v1553_v59 = vpack.c.bf16 %v787_v49, %v786_v48  ;;  %v288_v40 = vrot.slane %v2126_v25, 7 }
  0x85   : > { %1546 = vmatpush3.bf16.msra.mxu1 %v1545_v33  ;;  %v789_v62 = vld [vmem:[#allocation7 + $0x158] sm:$0xff]  ;;  %v1493_v63 = vpack.c.bf16 %v325_v55, %v323_v54  ;;  %v806_v1 = vld [vmem:[#allocation7 + $0x1e0] sm:$0xff]  ;;  %v807_v2 = vld [vmem:[#allocation7 + $0x1e8] sm:$0xff]  ;;  %v294_v31 = vsel %vm290_vm0, %v289_v23, %v286_v22  ;;  %v287_v33 = vrot.slane %v2121_v11, 7 }
  0x86   : > { %1466 = vmatpush1.bf16.msra.mxu0 %v1465_v44  ;;  %v324_v44 = vld [vmem:[#allocation5 + $0xa8] sm:$0xff]  ;;  %1548 = vmatprep.subr.bf16.mxu1 %v1547_v34  ;;  %v327_v4 = vld [vmem:[#allocation5 + $0xc0] sm:$0xff]  ;;  %v329_v5 = vld [vmem:[#allocation5 + $0xd0] sm:$0xff] }
  0x87   : > { %1468 = vmatprep.subr.bf16.mxu0 %v1467_v45  ;;  %v326_v45 = vld [vmem:[#allocation5 + $0xb8] sm:$0xff]  ;;  %v332_v7 = vld [vmem:[#allocation5 + $0xe8] sm:$0xff]  ;;  %v790_v12 = vld [vmem:[#allocation7 + $0x160] sm:$0xff]  ;;  %v1497_v14 = vpack.c.bf16 %v329_v5, %v327_v4  ;;  %v292_v49 = vsel %vm290_vm0, %v287_v33, %v288_v40 }
  0x88   : > { %v1491_v53 = vpack.c.bf16 %v326_v45, %v324_v44  ;;  %v334_v8 = vld [vmem:[#allocation5 + $0xf8] sm:$0xff]  ;;  %v791_v13 = vld [vmem:[#allocation7 + $0x168] sm:$0xff]  ;;  %v331_v16 = vld [vmem:[#allocation5 + $0xe0] sm:$0xff] }
  0x89   : > { %1550 = vmatpush3.bf16.msra.mxu1 %v1549_v46  ;;  %v333_v17 = vld [vmem:[#allocation5 + $0xf0] sm:$0xff]  ;;  %v565_v19 = vld [vmem:[#allocation5 + $0x208] sm:$0xff]  ;;  %v567_v20 = vld [vmem:[#allocation5 + $0x218] sm:$0xff]  ;;  %v1561_v21 = vpack.c.bf16 %v791_v13, %v790_v12 }
  0x8a   : > { %1470 = vmatpush1.bf16.msra.mxu0 %v1469_v50  ;;  %v1489_v50 = vpack.c.bf16 %v321_v43, %v319_v42  ;;  %1552 = vmatprep.subr.bf16.mxu1 %v1551_v47  ;;  %v1503_v26 = vpack.c.bf16 %v567_v20, %v565_v19  ;;  %v564_v27 = vld [vmem:[#allocation5 + $0x200] sm:$0xff]  ;;  %v569_v29 = vld [vmem:[#allocation5 + $0x228] sm:$0xff]  ;;  %v571_v30 = vld [vmem:[#allocation5 + $0x238] sm:$0xff]  ;;  %v293_v42 = vsel %vm290_vm0, %v286_v22, %v287_v33  ;;  %v547_v19 = vrot.slane %v2121_v11, 1 }
  0x8b   : > { %1472 = vmatprep.subr.bf16.mxu0 %v1471_v51  ;;  %v804_v51 = vld [vmem:[#allocation7 + $0x1d0] sm:$0xff]  ;;  %v1507_v34 = vpack.c.bf16 %v571_v30, %v569_v29  ;;  %v568_v35 = vld [vmem:[#allocation5 + $0x220] sm:$0xff]  ;;  %v575_v39 = vld [vmem:[#allocation5 + $0x258] sm:$0xff] }
  0x8c   : > { %v1555_v60 = vpack.c.bf16 %v805_v52, %v804_v51  ;;  %v570_v36 = vld [vmem:[#allocation5 + $0x230] sm:$0xff]  ;;  %v572_v44 = vld [vmem:[#allocation5 + $0x240] sm:$0xff]  ;;  %v577_v46 = vld [vmem:[#allocation5 + $0x268] sm:$0xff] }
  0x8d   : > { %433 = vmatmul.mubr.f32.vlgmr.msra.gmra.mrb[0].mxu0 %v2116_v56  ;;  %1554 = vmatpush3.bf16.msra.mxu1 %v1553_v59  ;;  %v574_v45 = vld [vmem:[#allocation5 + $0x250] sm:$0xff]  ;;  %v579_v47 = vld [vmem:[#allocation5 + $0x278] sm:$0xff]  ;;  %v576_v51 = vld [vmem:[#allocation5 + $0x260] sm:$0xff] }
  0x8e   : > { %1474 = vmatpush1.bf16.msra.mxu0 %v1473_v57  ;;  %438 = vmatprep.mubr.f32.mxu0 %v1886_v0  ;;  %v328_v57 = vld [vmem:[#allocation5 + $0xc8] sm:$0xff]  ;;  %v1513_v48 = vpack.c.bf16 %v574_v45, %v572_v44  ;;  %v578_v52 = vld [vmem:[#allocation5 + $0x270] sm:$0xff]  ;;  %v583_v54 = vld [vmem:[#allocation5 + $0x298] sm:$0xff] }
  0x8f   : > { %1476 = vmatprep.subr.bf16.mxu0 %v1475_v61  ;;  %v788_v61 = vld [vmem:[#allocation7 + $0x150] sm:$0xff]  ;;  %v1495_v3 = vpack.c.bf16 %v330_v58, %v328_v57  ;;  %1556 = vmatprep.subr.bf16.mxu1 %v1555_v60  ;;  %v1517_v55 = vpack.c.bf16 %v578_v52, %v576_v51  ;;  %v291_v57 = vsel %vm290_vm0, %v288_v40, %v289_v23  ;;  %v580_v59 = vld [vmem:[#allocation5 + $0x280] sm:$0xff]  ;;  %v589_v4 = vld [vmem:[#allocation5 + $0x2c8] sm:$0xff]  ;;  %v2166_v23 = vadd.s32 8, %v2135_v18 }
  0x90   : > { %v1557_v9 = vpack.c.bf16 %v789_v62, %v788_v61  ;;  %v582_v60 = vld [vmem:[#allocation5 + $0x290] sm:$0xff]  ;;  %v585_v61 = vld [vmem:[#allocation5 + $0x2a8] sm:$0xff]  ;;  %v587_v62 = vld [vmem:[#allocation5 + $0x2b8] sm:$0xff]  ;;  %v701_v40 = vsub.s32 1, %v2135_v18 }
  0x91   : > { %439 = vmatmul.mubr.f32.gmra.mrb[2].mxu0 %v2121_v11  ;;  %v591_v5 = vld [vmem:[#allocation5 + $0x2d8] sm:$0xff]  ;;  %vm1306_vm3 = vcmp.ne.s32.totalorder %v2166_v23, 15  ;;  %v808_v29 = vld [vmem:[#allocation7 + $0x1f0] sm:$0xff] }
  0x92   : > { %1478 = vmatpush1.bf16.msra.mxu0 %v1477_v10  ;;  %444 = vmatprep.mubr.f32.mxu0 %v1886_v0  ;;  %v1559_v10 = vpack.c.bf16 %v807_v2, %v806_v1  ;;  %v1523_v1 = vpack.c.bf16 %v587_v62, %v585_v61  ;;  %v584_v2 = vld [vmem:[#allocation5 + $0x2a0] sm:$0xff]  ;;  %v595_v12 = vld [vmem:[#allocation5 + $0x2f8] sm:$0xff]  ;;  %v766_v62 = vld [vmem:[#allocation7 + $0xa8] sm:$0xff] }
  0x93   : > { %1480 = vmatprep.subr.bf16.mxu0 %v1479_v15  ;;  %v1499_v15 = vpack.c.bf16 %v334_v8, %v332_v7  ;;  %1558 = vmatpush3.bf16.msra.mxu1 %v1557_v9  ;;  %v1527_v7 = vpack.c.bf16 %v591_v5, %v589_v4  ;;  %v588_v8 = vld [vmem:[#allocation5 + $0x2c0] sm:$0xff]  ;;  %v590_v9 = vld [vmem:[#allocation5 + $0x2d0] sm:$0xff]  ;;  %v809_v30 = vld [vmem:[#allocation7 + $0x1f8] sm:$0xff] }
  0x94   : > { %1560 = vmatprep.subr.bf16.mxu1 %v1559_v10  ;;  %v593_v10 = vld [vmem:[#allocation5 + $0x2e8] sm:$0xff]  ;;  %v1529_v13 = vpack.c.bf16 %v590_v9, %v588_v8  ;;  %v793_v33 = vld [vmem:[#allocation7 + $0x178] sm:$0xff]  ;;  %v765_v61 = vld [vmem:[#allocation7 + $0xa0] sm:$0xff] }
  0x95   : > { %445 = vmatmul.mubr.f32.gmra.mrb[4].mxu0 %v2126_v25 }
  0x96   : > { %1482 = vmatpush1.bf16.msra.mxu0 %v1481_v24  ;;  %450 = vmatprep.mubr.f32.mxu0 %v1886_v0  ;;  %v1501_v24 = vpack.c.bf16 %v333_v17, %v331_v16  ;;  %v594_v16 = vld [vmem:[#allocation5 + $0x2f0] sm:$0xff]  ;;  %v546_v17 = vrot.slane %v2116_v56, 1 }
  0x97   : > { %1484 = vmatprep.subr.bf16.mxu0 %v1483_v28  ;;  %v566_v28 = vld [vmem:[#allocation5 + $0x210] sm:$0xff]  ;;  %1562 = vmatpush3.bf16.msra.mxu1 %v1561_v21  ;;  %v548_v21 = vrot.slane %v2126_v25, 1 }
  0x98   : > { %v1505_v32 = vpack.c.bf16 %v566_v28, %v564_v27  ;;  %v553_v22 = vsel %vm550_vm2, %v546_v17, %v547_v19 }
  0x99   : > { %451 = vmatmul.mubr.f32.gmra.mrb[6].mxu0 %v2131_v38 }
  0x9a   : > { %1486 = vmatpush1.bf16.msra.mxu0 %v1485_v37  ;;  %521 = vmatprep.mubr.f32.mxu0 %v1886_v0  ;;  %v573_v37 = vld [vmem:[#allocation5 + $0x248] sm:$0xff] }
  0x9b   : > { %1488 = vmatprep.subr.bf16.mxu0 %v1487_v41  ;;  %v1509_v41 = vpack.c.bf16 %v570_v36, %v568_v35  ;;  %v1511_v43 = vpack.c.bf16 %v575_v39, %v573_v37  ;;  %v761_v35 = vld [vmem:[#allocation7 + $0x80] sm:$0xff]  ;;  %v762_v36 = vld [vmem:[#allocation7 + $0x88] sm:$0xff] }
  0x9c   : > { %v1567_v37 = vpack.c.bf16 %v762_v36, %v761_v35  ;;  %v693_v39 = vld [vmem:[%s2367_s2] sm:$0x3] }
  0x9e   : > { %1490 = vmatpush1.bf16.msra.mxu0 %v1489_v50  ;;  %v1515_v50 = vpack.c.bf16 %v579_v47, %v577_v46  ;;  %v745_v46 = vld [vmem:[#allocation7] sm:$0xff]  ;;  %v746_v47 = vld [vmem:[#allocation7 + $0x8] sm:$0xff] }
  0x9f   : > { %1492 = vmatprep.subr.bf16.mxu0 %v1491_v53  ;;  %v581_v53 = vld [vmem:[#allocation5 + $0x288] sm:$0xff] }
  0xa0   : > { %v1519_v58 = vpack.c.bf16 %v583_v54, %v581_v53  ;;  %v1569_v54 = vpack.c.bf16 %v746_v47, %v745_v46  ;;  %v770_v46 = vld [vmem:[#allocation7 + $0xc8] sm:$0xff] }
  0xa2   : > { %1494 = vmatpush1.bf16.msra.mxu0 %v1493_v63  ;;  %v1521_v63 = vpack.c.bf16 %v582_v60, %v580_v59 }
  0xa3   : > { %1496 = vmatprep.subr.bf16.mxu0 %v1495_v3  ;;  %v586_v3 = vld [vmem:[#allocation5 + $0x2b0] sm:$0xff] }
  0xa4   : > { %v1525_v6 = vpack.c.bf16 %v586_v3, %v584_v2 }
  0xa6   : > { %1498 = vmatpush1.bf16.msra.mxu0 %v1497_v14  ;;  %v1531_v14 = vpack.c.bf16 %v595_v12, %v593_v10 }
  0xa7   : > { %1500 = vmatprep.subr.bf16.mxu0 %v1499_v15  ;;  %v592_v15 = vld [vmem:[#allocation5 + $0x2e0] sm:$0xff] }
  0xa8   : > { %v1533_v20 = vpack.c.bf16 %v594_v16, %v592_v15  ;;  %v750_v15 = vld [vmem:[#allocation7 + $0x28] sm:$0xff] }
  0xaa   : > { %1502 = vmatpush1.bf16.msra.mxu0 %v1501_v24  ;;  %v552_v24 = vsel %vm550_vm2, %v547_v19, %v548_v21 }
  0xab   : > { %1504 = vmatprep.subr.bf16.mxu0 %v1503_v26  ;;  %v549_v26 = vrot.slane %v2131_v38, 1 }
  0xad   : > { %1271 = vmatmul.mubr.msk.f32.vlgmr.msra.gmra.mrb[0].mxu0 %vm1305_vm1, %v294_v31  ;;  %v551_v27 = vsel %vm550_vm2, %v548_v21, %v549_v26  ;;  %v554_v28 = vsel %vm550_vm2, %v549_v26, %v546_v17  ;;  %v1563_v31 = vpack.c.bf16 %v809_v30, %v808_v29  ;;  %v767_v21 = vld [vmem:[#allocation7 + $0xb0] sm:$0xff] }
  0xae   : > { %1506 = vmatpush1.bf16.msra.mxu0 %v1505_v32  ;;  %527 = vmatprep.mubr.f32.mxu0 %v1886_v0  ;;  %v792_v32 = vld [vmem:[#allocation7 + $0x170] sm:$0xff] }
  0xaf   : > { %1508 = vmatprep.subr.bf16.mxu0 %v1507_v34  ;;  %v1565_v34 = vpack.c.bf16 %v793_v33, %v792_v32  ;;  %1564 = vmatprep.subr.bf16.mxu1 %v1563_v31 }
  0xb1   : > { %528 = vmatmul.mubr.f32.gmra.mrb[2].mxu0 %v293_v42  ;;  %1566 = vmatpush3.bf16.msra.mxu1 %v1565_v34  ;;  %v2188_v42 = vrot.slane %v693_v39, %v701_v40 }
  0xb2   : > { %1510 = vmatpush1.bf16.msra.mxu0 %v1509_v41  ;;  %533 = vmatprep.mubr.f32.mxu0 %v1886_v0 }
  0xb3   : > { %1512 = vmatprep.subr.bf16.mxu0 %v1511_v43  ;;  %1568 = vmatprep.subr.bf16.mxu1 %v1567_v37 }
  0xb5   : > { %1273 = vmatmul.mubr.msk.f32.gmra.mrb[4].mxu0 %vm1305_vm1, %v292_v49  ;;  %v763_v49 = vld [vmem:[#allocation7 + $0x90] sm:$0xff] }
  0xb6   : > { %1514 = vmatpush1.bf16.msra.mxu0 %v1513_v48  ;;  %539 = vmatprep.mubr.f32.mxu0 %v1886_v0 }
  0xb7   : > { %1516 = vmatprep.subr.bf16.mxu0 %v1515_v50  ;;  %v764_v50 = vld [vmem:[#allocation7 + $0x98] sm:$0xff] }
  0xb8   : > { %v1571_v60 = vpack.c.bf16 %v764_v50, %v763_v49  ;;  %v754_v49 = vld [vmem:[#allocation7 + $0x48] sm:$0xff] }
  0xb9   : > { %540 = vmatmul.mubr.f32.gmra.mrb[6].mxu0 %v291_v57  ;;  %v748_v57 = vld [vmem:[#allocation7 + $0x18] sm:$0xff] }
  0xba   : > { %1518 = vmatpush1.bf16.msra.mxu0 %v1517_v55  ;;  %660 = vmatprep.mubr.f32.mxu0 %v1886_v0  ;;  %v747_v55 = vld [vmem:[#allocation7 + $0x10] sm:$0xff] }
  0xbb   : > { %1520 = vmatprep.subr.bf16.mxu0 %v1519_v58  ;;  %v1573_v2 = vpack.c.bf16 %v748_v57, %v747_v55 }
  0xbe   : > { %1522 = vmatpush1.bf16.msra.mxu0 %v1521_v63 }
  0xbf   : > { %1524 = vmatprep.subr.bf16.mxu0 %v1523_v1 }
  0xc2   : > { %1526 = vmatpush1.bf16.msra.mxu0 %v1525_v6 }
  0xc3   : > { %1528 = vmatprep.subr.bf16.mxu0 %v1527_v7  ;;  %v1575_v7 = vpack.c.bf16 %v766_v62, %v765_v61 }
  0xc6   : > { %1530 = vmatpush1.bf16.msra.mxu0 %v1529_v13 }
  0xc7   : > { %1532 = vmatprep.subr.bf16.mxu0 %v1531_v14  ;;  %v749_v14 = vld [vmem:[#allocation7 + $0x20] sm:$0xff] }
  0xc8   : > { %v1577_v30 = vpack.c.bf16 %v750_v15, %v749_v14 }
  0xca   : > { %1534 = vmatpush1.bf16.msra.mxu0 %v1533_v20 }
  0xcd   : > { %661 = vmatmul.mubr.f32.vlgmr.msra.gmra.mrb[0].mxu0 %v553_v22  ;;  %v768_v22 = vld [vmem:[#allocation7 + $0xb8] sm:$0xff] }
  0xce   : > { %666 = vmatprep.mubr.f32.mxu0 %v1886_v0  ;;  %v1579_v37 = vpack.c.bf16 %v768_v22, %v767_v21  ;;  %v776_v21 = vld [vmem:[#allocation7 + $0xf8] sm:$0xff] }
  0xd1   : > { %1275 = vmatmul.mubr.msk.f32.gmra.mrb[2].mxu0 %vm1306_vm3, %v552_v24 }
  0xd2   : > { %672 = vmatprep.mubr.f32.mxu0 %v1886_v0 }
  0xd5   : > { %673 = vmatmul.mubr.f32.gmra.mrb[4].mxu0 %v551_v27 }
  0xd6   : > { %678 = vmatprep.mubr.f32.mxu0 %v1886_v0  ;;  %v697_v0 = vsub.s32 0, %v2135_v18  ;;  %v1015_v18 = vld [vmem:[#allocation7 + $0x250] sm:$0xff] }
  0xd8   : > { %v698_v41 = vrot.slane %v693_v39, %v697_v0  ;;  %v751_v0 = vld [vmem:[#allocation7 + $0x30] sm:$0xff]  ;;  %v752_v39 = vld [vmem:[#allocation7 + $0x38] sm:$0xff] }
  0xd9   : > { %1277 = vmatmul.mubr.msk.f32.gmra.mrb[6].mxu0 %vm1306_vm3, %v554_v28 }
 0x1a0   : > { %v662_v43 = vpop.f32.mrb[0].mxu0 }
 0x1a1   : > { %v705_v44 = vadd.f32 %v698_v41, %v662_v43  ;;  %v664_v45 = vpop.f32.mrb[1].mxu0 }
 0x1a2   : > { %v706_v48 = vadd.f32 %v2188_v42, %v664_v45  ;;  %v769_v45 = vld [vmem:[#allocation7 + $0xc0] sm:$0xff] }
 0x1a3   : > { %v2191_v51 = vmax.f32 %v705_v44, 0.0 }
 0x1a4   : > { %v2193_v52 = vmax.f32 %v706_v48, 0.0  ;;  %v668_v53 = vpop.f32.mrb[2].mxu0  ;;  %v753_v48 = vld [vmem:[#allocation7 + $0x40] sm:$0xff] }
 0x1a5   : > { %v707_v58 = vadd.f32 %v698_v41, %v668_v53  ;;  %v670_v59 = vpop.f32.mrb[3].mxu0  ;;  %v721_v3 = vrot.slane %v2191_v51, 7  ;;  %v980_v4 = vrot.slane %v2191_v51, 1  ;;  %v1585_v62 = vpack.c.bf16 %v754_v49, %v753_v48  ;;  %v1009_v49 = vld [vmem:[#allocation7 + $0x220] sm:$0xff] }
 0x1a6   : > { %v708_v63 = vadd.f32 %v2188_v42, %v670_v59  ;;  %874 = vmatprep.mubr.f32.mxu1 %v2193_v52  ;;  %v722_v8 = vrot.slane %v2193_v52, 7  ;;  %v981_v16 = vrot.slane %v2193_v52, 1  ;;  %v1583_v59 = vpack.c.bf16 %v770_v46, %v769_v45  ;;  %v1025_v45 = vld [vmem:[#allocation7 + $0x2a0] sm:$0xff]  ;;  %v1026_v46 = vld [vmem:[#allocation7 + $0x2a8] sm:$0xff] }
 0x1a7   : > { %v715_v1 = vmax.f32 %v707_v58, 0.0  ;;  %875 = vmatmul.mubr.f32.vlgmr.msra.gmra.mrb[0].mxu1 %v2191_v51  ;;  %v1607_v48 = vpack.c.bf16 %v1026_v46, %v1025_v45 }
 0x1a8   : > { %v716_v5 = vmax.f32 %v708_v63, 0.0  ;;  %1570 = vmatpush3.bf16.msra.mxu1 %v1569_v54  ;;  %v674_v6 = vpop.f32.mrb[4].mxu0  ;;  %v1581_v54 = vpack.c.bf16 %v752_v39, %v751_v0  ;;  %v771_v63 = vld [vmem:[#allocation7 + $0xd0] sm:$0xff]  ;;  %v1024_v0 = vld [vmem:[#allocation7 + $0x298] sm:$0xff] }
 0x1a9   : > { %v723_v9 = vrot.slane %v715_v1, 7  ;;  %v982_v10 = vrot.slane %v715_v1, 1  ;;  %v709_v12 = vadd.f32 %v698_v41, %v674_v6  ;;  %v676_v13 = vpop.f32.mrb[5].mxu0  ;;  %1572 = vmatprep.subr.bf16.mxu1 %v1571_v60 }
 0x1aa   : > { %v724_v17 = vrot.slane %v716_v5, 7  ;;  %v983_v19 = vrot.slane %v716_v5, 1  ;;  %v710_v20 = vadd.f32 %v2188_v42, %v676_v13  ;;  %879 = vmatprep.mubr.f32.mxu1 %v716_v5  ;;  %v774_v13 = vld [vmem:[#allocation7 + $0xe8] sm:$0xff] }
 0x1ab   : > { %v717_v24 = vmax.f32 %v709_v12, 0.0  ;;  %880 = vmatmul.mubr.f32.gmra.mrb[2].mxu1 %v715_v1  ;;  %v2207_v26 = vsel %vm290_vm0, %v721_v3, %v723_v9  ;;  %v2213_v27 = vsel %vm550_vm2, %v980_v4, %v982_v10  ;;  %v772_v1 = vld [vmem:[#allocation7 + $0xd8] sm:$0xff] }
 0x1ac   : > { %v718_v28 = vmax.f32 %v710_v20, 0.0  ;;  %1574 = vmatpush3.bf16.msra.mxu1 %v1573_v2  ;;  %v680_v29 = vpop.f32.mrb[6].mxu0  ;;  %v2219_v31 = vsel %vm290_vm0, %v722_v8, %v724_v17  ;;  %v2223_v32 = vsel %vm550_vm2, %v981_v16, %v983_v19  ;;  %v1587_v52 = vpack.c.bf16 %v772_v1, %v771_v63  ;;  %v756_v12 = vld [vmem:[#allocation7 + $0x58] sm:$0xff]  ;;  %v775_v20 = vld [vmem:[#allocation7 + $0xf0] sm:$0xff]  ;;  %v1013_v1 = vld [vmem:[#allocation7 + $0x240] sm:$0xff] }
 0x1ad   : > { %v725_v33 = vrot.slane %v717_v24, 7  ;;  %v984_v34 = vrot.slane %v717_v24, 1  ;;  %v711_v35 = vadd.f32 %v698_v41, %v680_v29  ;;  %v682_v36 = vpop.f32.mrb[7].mxu0  ;;  %1576 = vmatprep.subr.bf16.mxu1 %v1575_v7  ;;  %v1595_v22 = vpack.c.bf16 %v776_v21, %v775_v20  ;;  %v1021_v29 = vld [vmem:[#allocation7 + $0x280] sm:$0xff]  ;;  %v1020_v21 = vld [vmem:[#allocation7 + $0x278] sm:$0xff] }
 0x1ae   : > { %v726_v40 = vrot.slane %v718_v28, 7  ;;  %v985_v43 = vrot.slane %v718_v28, 1  ;;  %v712_v44 = vadd.f32 %v2188_v42, %v682_v36  ;;  %884 = vmatprep.mubr.f32.mxu1 %v718_v28  ;;  %v760_v28 = vld [vmem:[#allocation7 + $0x78] sm:$0xff]  ;;  %v1006_v36 = vld [vmem:[#allocation7 + $0x208] sm:$0xff] }
 0x1af   : > { %v719_v47 = vmax.f32 %v711_v35, 0.0  ;;  %885 = vmatmul.mubr.f32.gmra.mrb[4].mxu1 %v717_v24  ;;  %v2228_v50 = vsel %vm290_vm0, %v723_v9, %v725_v33  ;;  %v2232_v41 = vsel %vm550_vm2, %v982_v10, %v984_v34  ;;  %v759_v24 = vld [vmem:[#allocation7 + $0x70] sm:$0xff]  ;;  %v1005_v35 = vld [vmem:[#allocation7 + $0x200] sm:$0xff] }
 0x1b0   : > { %v720_v53 = vmax.f32 %v712_v44, 0.0  ;;  %1578 = vmatpush3.bf16.msra.mxu1 %v1577_v30  ;;  %v2236_v42 = vsel %vm290_vm0, %v724_v17, %v726_v40  ;;  %v2240_v55 = vsel %vm550_vm2, %v983_v19, %v985_v43  ;;  %v757_v17 = vld [vmem:[#allocation7 + $0x60] sm:$0xff]  ;;  %v758_v19 = vld [vmem:[#allocation7 + $0x68] sm:$0xff]  ;;  %v1601_v39 = vpack.c.bf16 %v1006_v36, %v1005_v35  ;;  %v1008_v44 = vld [vmem:[#allocation7 + $0x218] sm:$0xff] }
 0x1b1   : > { %v727_v57 = vrot.slane %v719_v47, 7  ;;  %v986_v58 = vrot.slane %v719_v47, 1  ;;  %1580 = vmatprep.subr.bf16.mxu1 %v1579_v37  ;;  %v1022_v30 = vld [vmem:[#allocation7 + $0x288] sm:$0xff]  ;;  %v1023_v37 = vld [vmem:[#allocation7 + $0x290] sm:$0xff] }
 0x1b2   : > { %v728_v60 = vrot.slane %v720_v53, 7  ;;  %v987_v61 = vrot.slane %v720_v53, 1  ;;  %889 = vmatprep.mubr.f32.mxu1 %v720_v53  ;;  %v1010_v53 = vld [vmem:[#allocation7 + $0x228] sm:$0xff] }
 0x1b3   : > { %890 = vmatmul.mubr.f32.gmra.mrb[6].mxu1 %v719_v47  ;;  %v735_v2 = vsel %vm290_vm0, %v727_v57, %v721_v3  ;;  %v2248_v5 = vsel %vm290_vm0, %v725_v33, %v727_v57  ;;  %v2252_v6 = vsel %vm550_vm2, %v984_v34, %v986_v58  ;;  %v2258_v7 = vsel %vm550_vm2, %v986_v58, %v980_v4  ;;  %v755_v4 = vld [vmem:[#allocation7 + $0x50] sm:$0xff]  ;;  %v1028_v57 = vld [vmem:[#allocation7 + $0x2b8] sm:$0xff] }
 0x1b4   : > { %1582 = vmatpush3.bf16.msra.mxu1 %v1581_v54  ;;  %v736_v3 = vsel %vm290_vm0, %v728_v60, %v722_v8  ;;  %v2266_v9 = vsel %vm290_vm0, %v726_v40, %v728_v60  ;;  %v2270_v10 = vsel %vm550_vm2, %v985_v43, %v987_v61  ;;  %v2274_v51 = vsel %vm550_vm2, %v987_v61, %v981_v16  ;;  %v773_v8 = vld [vmem:[#allocation7 + $0xe0] sm:$0xff]  ;;  %v1007_v43 = vld [vmem:[#allocation7 + $0x210] sm:$0xff] }
 0x1b5   : > { %1279 = vmatprep.mubr.msk.f32.mxu1 %vm1305_vm1, %v736_v3  ;;  %1584 = vmatprep.subr.bf16.mxu1 %v1583_v59  ;;  %v1589_v14 = vpack.c.bf16 %v756_v12, %v755_v4  ;;  %v1591_v15 = vpack.c.bf16 %v774_v13, %v773_v8  ;;  %v1593_v16 = vpack.c.bf16 %v758_v19, %v757_v17  ;;  %v1027_v54 = vld [vmem:[#allocation7 + $0x2b0] sm:$0xff]  ;;  %v1029_v61 = vld [vmem:[#allocation7 + $0x2c0] sm:$0xff]  ;;  %v1032_v3 = vld [vmem:[#allocation7 + $0x2d8] sm:$0xff] }
 0x1b6   : > { %v1597_v33 = vpack.c.bf16 %v760_v28, %v759_v24  ;;  %v1599_v34 = vpack.c.bf16 %v1022_v30, %v1021_v29  ;;  %v1603_v40 = vpack.c.bf16 %v1024_v0, %v1023_v37  ;;  %v1605_v47 = vpack.c.bf16 %v1008_v44, %v1007_v43  ;;  %v1011_v60 = vld [vmem:[#allocation7 + $0x230] sm:$0xff]  ;;  %v1033_v12 = vld [vmem:[#allocation7 + $0x2e0] sm:$0xff]  ;;  %v1036_v19 = vld [vmem:[#allocation7 + $0x2f8] sm:$0xff] }
 0x1b7   : > { %v1609_v58 = vpack.c.bf16 %v1010_v53, %v1009_v49  ;;  %v1611_v59 = vpack.c.bf16 %v1028_v57, %v1027_v54  ;;  %v1035_v17 = vld [vmem:[#allocation7 + $0x2f0] sm:$0xff] }
 0x1b8   : > { %1586 = vmatpush3.bf16.msra.mxu1 %v1585_v62  ;;  %v1030_v62 = vld [vmem:[#allocation7 + $0x2c8] sm:$0xff]  ;;  %v1627_v20 = vpack.c.bf16 %v1036_v19, %v1035_v17 }
 0x1b9   : > { %1588 = vmatprep.subr.bf16.mxu1 %v1587_v52  ;;  %v1615_v63 = vpack.c.bf16 %v1030_v62, %v1029_v61 }
 0x1bc   : > { %1590 = vmatpush3.bf16.msra.mxu1 %v1589_v14  ;;  %v1017_v14 = vld [vmem:[#allocation7 + $0x260] sm:$0xff] }
 0x1bd   : > { %1592 = vmatprep.subr.bf16.mxu1 %v1591_v15  ;;  %v1018_v15 = vld [vmem:[#allocation7 + $0x268] sm:$0xff] }
 0x1c0   : > { %1594 = vmatpush3.bf16.msra.mxu1 %v1593_v16 }
 0x1c1   : > { %1596 = vmatprep.subr.bf16.mxu1 %v1595_v22 }
 0x1c4   : > { %1598 = vmatpush3.bf16.msra.mxu1 %v1597_v33 }
 0x1c5   : > { %1600 = vmatprep.subr.bf16.mxu1 %v1599_v34 }
 0x1c7   : > { %1281 = vmatmul.mubr.msk.f32.vlgmr.msra.gmra.mrb[8].mxu1 %vm1305_vm1, %v735_v2  ;;  %v1031_v2 = vld [vmem:[#allocation7 + $0x2d0] sm:$0xff] }
 0x1c8   : > { %964 = vmatprep.mubr.f32.mxu1 %v2219_v31  ;;  %1602 = vmatpush3.bf16.msra.mxu1 %v1601_v39  ;;  %v1012_v31 = vld [vmem:[#allocation7 + $0x238] sm:$0xff]  ;;  %v1619_v4 = vpack.c.bf16 %v1032_v3, %v1031_v2 }
 0x1c9   : > { %1604 = vmatprep.subr.bf16.mxu1 %v1603_v40 }
 0x1cb   : > { %965 = vmatmul.mubr.f32.gmra.mrb[10].mxu1 %v2207_v26  ;;  %v1613_v26 = vpack.c.bf16 %v1012_v31, %v1011_v60 }
 0x1cc   : > { %1283 = vmatprep.mubr.msk.f32.mxu1 %vm1305_vm1, %v2236_v42  ;;  %1606 = vmatpush3.bf16.msra.mxu1 %v1605_v47  ;;  %v1014_v42 = vld [vmem:[#allocation7 + $0x248] sm:$0xff] }
 0x1cd   : > { %1608 = vmatprep.subr.bf16.mxu1 %v1607_v48  ;;  %v1617_v52 = vpack.c.bf16 %v1014_v42, %v1013_v1 }
 0x1cf   : > { %1285 = vmatmul.mubr.msk.f32.gmra.mrb[12].mxu1 %vm1305_vm1, %v2228_v50  ;;  %v1016_v50 = vld [vmem:[#allocation7 + $0x258] sm:$0xff] }
 0x1d0   : > { %974 = vmatprep.mubr.f32.mxu1 %v2266_v9  ;;  %1610 = vmatpush3.bf16.msra.mxu1 %v1609_v58  ;;  %v1034_v9 = vld [vmem:[#allocation7 + $0x2e8] sm:$0xff]  ;;  %v1621_v8 = vpack.c.bf16 %v1016_v50, %v1015_v18  ;;  %v1294_v58 = vld [vmem:[%s2369_s4] ss:$0 sm:$0xff] }
 0x1d1   : > { %1612 = vmatprep.subr.bf16.mxu1 %v1611_v59  ;;  %v1623_v13 = vpack.c.bf16 %v1034_v9, %v1033_v12 }
 0x1d3   : > { %975 = vmatmul.mubr.f32.gmra.mrb[14].mxu1 %v2248_v5  ;;  %v1625_v5 = vpack.c.bf16 %v1018_v15, %v1017_v14 }
 0x1d4   : > { %1614 = vmatpush3.bf16.msra.mxu1 %v1613_v26  ;;  %1101 = vmatprep.mubr.f32.mxu1 %v2223_v32  ;;  %v1019_v32 = vld [vmem:[#allocation7 + $0x270] sm:$0xff] }
 0x1d5   : > { %1616 = vmatprep.subr.bf16.mxu1 %v1615_v63  ;;  %v1629_v16 = vpack.c.bf16 %v1020_v21, %v1019_v32 }
 0x1d8   : > { %1618 = vmatpush3.bf16.msra.mxu1 %v1617_v52 }
 0x1d9   : > { %1620 = vmatprep.subr.bf16.mxu1 %v1619_v4 }
 0x1dc   : > { %1622 = vmatpush3.bf16.msra.mxu1 %v1621_v8 }
 0x1dd   : > { %1624 = vmatprep.subr.bf16.mxu1 %v1623_v13 }
 0x1e0   : > { %1626 = vmatpush3.bf16.msra.mxu1 %v1625_v5 }
 0x1e1   : > { %1628 = vmatprep.subr.bf16.mxu1 %v1627_v20 }
 0x1e4   : > { %1630 = vmatpush3.bf16.msra.mxu1 %v1629_v16 }
 0x1e7   : > { %1102 = vmatmul.mubr.f32.vlgmr.msra.gmra.mrb[16].mxu1 %v2213_v27 }
 0x1e8   : > { %1287 = vmatprep.mubr.msk.f32.mxu1 %vm1306_vm3, %v2240_v55 }
 0x1eb   : > { %1289 = vmatmul.mubr.msk.f32.gmra.mrb[18].mxu1 %vm1306_vm3, %v2232_v41 }
 0x1ec   : > { %1111 = vmatprep.mubr.f32.mxu1 %v2270_v10 }
 0x1ef   : > { %1112 = vmatmul.mubr.f32.gmra.mrb[20].mxu1 %v2252_v6 }
 0x1f0   : > { %1291 = vmatprep.mubr.msk.f32.mxu1 %vm1306_vm3, %v2274_v51 }
 0x1f3   : > { %1293 = vmatmul.mubr.msk.f32.gmra.mrb[22].mxu1 %vm1306_vm3, %v2258_v7 }
 0x27a   : > { %v1339_v27 = vpop.f32.mrb[0].mxu1 }
 0x27b   : > { %v1340_v22 = vpop.f32.mrb[1].mxu1 }
 0x27c   : > { %v1341_v24 = vadd.f32 %v1340_v22, %v1339_v27 }
 0x27e   : > { %v1342_v55 = vpop.f32.mrb[2].mxu1 }
 0x27f   : > { %v1343_v28 = vpop.f32.mrb[3].mxu1 }
 0x280   : > { %v1344_v29 = vadd.f32 %v1343_v28, %v1342_v55 }
 0x282   : > { %v1345_v30 = vpop.f32.mrb[4].mxu1 }
 0x283   : > { %v1346_v41 = vpop.f32.mrb[5].mxu1 }
 0x284   : > { %v1347_v33 = vadd.f32 %v1346_v41, %v1345_v30 }
 0x286   : > { %v1348_v10 = vpop.f32.mrb[6].mxu1 }
 0x287   : > { %v1349_v34 = vpop.f32.mrb[7].mxu1 }
 0x288   : > { %v1350_v6 = vadd.f32 %v1349_v34, %v1348_v10 }
 0x29a   : > { %v1383_v35 = vpop.f32.mrb[8].mxu1 }
 0x29b   : > { %v1384_v36 = vpop.f32.mrb[9].mxu1 }
 0x29c   : > { %v1385_v37 = vadd.f32 %v1384_v36, %v1383_v35 }
 0x29e   : > { %v962_v51 = vadd.f32 %v1385_v37, %v1341_v24  ;;  %v1386_v0 = vpop.f32.mrb[10].mxu1 }
 0x29f   : > { %v1387_v39 = vpop.f32.mrb[11].mxu1 }
 0x2a0   : > { %v1388_v23 = vadd.f32 %v1387_v39, %v1386_v0 }
 0x2a2   : > { %v967_v7 = vadd.f32 %v1388_v23, %v1344_v29  ;;  %v1389_v40 = vpop.f32.mrb[12].mxu1 }
 0x2a3   : > { %v1390_v43 = vpop.f32.mrb[13].mxu1 }
 0x2a4   : > { %v1391_v44 = vadd.f32 %v1390_v43, %v1389_v40 }
 0x2a6   : > { %v972_v45 = vadd.f32 %v1391_v44, %v1347_v33  ;;  %v1392_v46 = vpop.f32.mrb[14].mxu1 }
 0x2a7   : > { %v1393_v47 = vpop.f32.mrb[15].mxu1 }
 0x2a8   : > { %v1394_v48 = vadd.f32 %v1393_v47, %v1392_v46 }
 0x2aa   : > { %v977_v49 = vadd.f32 %v1394_v48, %v1350_v6 }
 0x2ba   : > { %v1427_v53 = vpop.f32.mrb[16].mxu1 }
 0x2bb   : > { %v1428_v54 = vpop.f32.mrb[17].mxu1 }
 0x2bc   : > { %v1429_v57 = vadd.f32 %v1428_v54, %v1427_v53 }
 0x2be   : > { %v1122_v59 = vadd.f32 %v1429_v57, %v962_v51  ;;  %v1430_v60 = vpop.f32.mrb[18].mxu1 }
 0x2bf   : > { %v1431_v31 = vpop.f32.mrb[19].mxu1 }
 0x2c0   : > { %v1133_v61 = vadd.f32 %v1294_v58, %v1122_v59  ;;  %v1432_v62 = vadd.f32 %v1431_v31, %v1430_v60 }
 0x2c2   : > { %v1137_v26 = vadd.f32 %v1133_v61, %v2116_v56  ;;  %v1123_v63 = vadd.f32 %v1432_v62, %v967_v7  ;;  %v1433_v1 = vpop.f32.mrb[20].mxu1 }
 0x2c3   : > { %v1434_v42 = vpop.f32.mrb[21].mxu1 }
 0x2c4   : > { %v1141_v2 = vmax.f32 %v1137_v26, 0.0  ;;  %v1134_v3 = vadd.f32 %v1294_v58, %v1123_v63  ;;  %v1435_v52 = vadd.f32 %v1434_v42, %v1433_v1 }
 0x2c6   : > { %1145 = vst [vmem:[%s272_s10] sm:$0xff] %v1141_v2  ;;  %v1138_v4 = vadd.f32 %v1134_v3, %v2121_v11  ;;  %v1124_v18 = vadd.f32 %v1435_v52, %v972_v45  ;;  %v1436_v50 = vpop.f32.mrb[22].mxu1 }
 0x2c7   : > { %v1437_v12 = vpop.f32.mrb[23].mxu1 }
 0x2c8   : > { %v1142_v9 = vmax.f32 %v1138_v4, 0.0  ;;  %v1135_v8 = vadd.f32 %v1294_v58, %v1124_v18  ;;  %v1438_v13 = vadd.f32 %v1437_v12, %v1436_v50 }
 0x2ca   : > { %1146 = vst [vmem:[%s272_s10 + $0x8] sm:$0xff] %v1142_v9  ;;  %v1139_v56 = vadd.f32 %v1135_v8, %v2126_v25  ;;  %v1125_v14 = vadd.f32 %v1438_v13, %v977_v49 }
 0x2cc   : > { %v1143_v15 = vmax.f32 %v1139_v56, 0.0  ;;  %v1136_v17 = vadd.f32 %v1294_v58, %v1125_v14 }
 0x2ce   : > { %1147 = vst [vmem:[%s272_s10 + $0x10] sm:$0xff] %v1143_v15  ;;  %v1140_v11 = vadd.f32 %v1136_v17, %v2131_v38 }
 0x2d0   : > { %v1144_v19 = vmax.f32 %v1140_v11, 0.0 }
 0x2d2   : > { %1148 = vst [vmem:[%s272_s10 + $0x18] sm:$0xff] %v1144_v19 }
 0x2d3   : > { %1820 = shalt.err (!%p1817_p2)
}
 0x2d4   : > { %s1821_s14 = scalar_lea.hbm %s2321_s11, 512  ;;  %s1825_s12 = scalar_lea.hbm %s2370_s5, 1024 }
 0x2d5   : > { %p1822_p13 = scmp.ne.s32.totalorder %s2321_s11, %s1821_s14  ;;  %p1826_p4 = scmp.lt.u32.totalorder %s2321_s11, %s2370_s5 }
 0x2d6   : > { %p1827_p7 = scmp.lt.u32.totalorder %s1825_s12, %s1821_s14  ;;  %p1829_p11 = scmp.lt.u32.totalorder %s1821_s14, %s2321_s11 }
 0x2d7   : > { %p1823_p6 = pnand %p1822_p13, %p2384_p0 }
 0x2d8   : > { %p1828_p8 = por %p1827_p7, %p1826_p4 }
 0x2d9   : > { %p1824_p10 = pneg %p1823_p6 }
 0x2da   : > { %p1830_p1 = por %p1829_p11, %p1828_p8 }
 0x2dc   : > { %p1831_p3 = pnand %p1830_p1, %p1824_p10 }
 0x2de   : > { %1834 = shalt.err (!%p1831_p3)
}
 0x2df   : > { %s1888_s15 = smov 128   ;;  %s1889_s9 = smov 8  }
 0x2e0   : > { %1657 = dma.vmem_to_hbm [thread:$0]  (%p2384_p0), %s2315_s28, 512, %s2321_s11, %s1150_s23, %s1888_s15, %s1888_s15, %s1889_s9  }
 0x2e1 PF: > { %s1179_s30 = sand.u32 1, %s1865_s18   ;;  %p2385_p5 = scmp.ne.s32.totalorder %s2375_s25, 0 }
 0x2e2   : > { %p2386_p9 = scmp.ge.s32.totalorder %s1877_s21, 2  ;;  %s1180_s7 = scalar_lea.sflag [#allocation4], %s1179_s30 }
 0x2e4   : > { %p1671_p12 = pnand %p2386_p9, %p2385_p5 }
 0x2e6   : > { %1860 = dma.done.wait (!%p1671_p12), %s1180_s7, 512  }
 0x2e7   : > { %1862 = vsyncadd (!%p1671_p12), %s1180_s7, 4294966784  ;;  %p19_p2 = scmp.ge.s32.totalorder %s2033_s16, 4   ;;  %s2387_s18 = smov %s1869_s19 }
 0x2e8   : > { %s2388_s19 = smov %s1873_s20  ;;  %s2389_s20 = smov %s2042_s27 }
 0x2e9   : > { %s2390_s21 = smov %s2033_s16  ;;  %21 = sbr.rel (!%p19_p2) target bundleno = 6 (0x6), region = 97 }
 0x2f0   :  { %1185 = vsyncpa [#allocation3], 1 }
 0x2f1   :  { %1187 = vsyncpa [#allocation3 + $0x1], 1 }
 0x2f2   :  { %1188 = vsyncpa [#allocation6], 1 }
 0x2f3   :  { %1189 = vsyncpa [#allocation4], 1 }
 0x2f4   :  { %1191 = vsyncpa [#allocation4 + $0x1], 1 }

</bundles_post_ra>
